<compile_context>
chip_gen: v6e
topology: v6e:2x2x1
jax: 0.10.0
libtpu: 0.0.40
codegen_flags: <defaults>
</compile_context>

<pallas_src>
import functools

import jax
import jax.numpy as jnp
from jax.experimental import pallas as pl
from jax.experimental.pallas import tpu as pltpu


# ---------------------------------------------------------------------------
# Fused single-pass kernel: squeeze + gate MLP + channel scale on one VMEM block
# ---------------------------------------------------------------------------
def _se_fused_kernel(x_ref, w1_ref, w2_ref, o_ref, *, inv_hw):
    # Squeeze: mean over the spatial (lane) axis, f32 accumulation without
    # materializing a full-block f32 copy of x.
    pooled = jnp.sum(x_ref[...], axis=-1, dtype=jnp.float32) * jnp.float32(inv_hw)  # (Bt, C)
    # Excitation MLP in f32 (tiny MXU matmuls).
    h = jnp.dot(pooled, w1_ref[...], preferred_element_type=jnp.float32)            # (Bt, hidden)
    h = h * jax.nn.sigmoid(h)                                                        # SiLU
    g = jax.nn.sigmoid(jnp.dot(h, w2_ref[...], preferred_element_type=jnp.float32)) # (Bt, C)
    # Scale: re-read the VMEM-resident block and broadcast the gate over lanes,
    # keeping the large multiply in the input dtype.
    o_ref[...] = x_ref[...] * g.astype(o_ref.dtype)[:, :, None]


# ---------------------------------------------------------------------------
# Two-pass fallback (per-sample slab too big for VMEM): pool+gate, then scale
# ---------------------------------------------------------------------------
def _se_pool_gate_kernel(x_ref, w1_ref, w2_ref, g_ref, acc_ref, *, inv_hw, hw_valid):
    k = pl.program_id(1)

    @pl.when(k == 0)
    def _():
        acc_ref[...] = jnp.zeros_like(acc_ref)

    x = x_ref[...]                                                     # (1, C, hw_tile)
    # Mask lanes past the true spatial extent (ragged last HW tile).
    lane = jax.lax.broadcasted_iota(jnp.int32, x.shape, 2) + k * x.shape[-1]
    x = jnp.where(lane < hw_valid, x, jnp.zeros_like(x))
    acc_ref[...] += jnp.sum(x, axis=-1, dtype=jnp.float32)             # (1, C)

    @pl.when(k == pl.num_programs(1) - 1)
    def _():
        pooled = acc_ref[...] * jnp.float32(inv_hw)                    # (1, C)
        h = jnp.dot(pooled, w1_ref[...], preferred_element_type=jnp.float32)
        h = h * jax.nn.sigmoid(h)
        g = jax.nn.sigmoid(jnp.dot(h, w2_ref[...], preferred_element_type=jnp.float32))
        g_ref[...] = g[:, :, None]                                     # (1, C, 1) f32


def _se_scale_kernel(x_ref, g_ref, o_ref):
    o_ref[...] = x_ref[...] * g_ref[...].astype(o_ref.dtype)           # gate (1,C,1) bcast over lanes


# ---------------------------------------------------------------------------
# Wrapper
# ---------------------------------------------------------------------------
def _vmem_capacity_bytes():
    try:
        info = pltpu.get_tpu_info()
        cap = getattr(info, "vmem_capacity_bytes", None)
        if cap:
            return int(cap)
    except Exception:
        pass
    return 64 * 1024 * 1024  # conservative: v7x per-TensorCore VMEM


def _round_down_multiple(n, m):
    return max((n // m) * m, m)


def squeeze_excitation(x, w1, w2, *, block_bytes=None, force_two_pass=False):
    """Pallas implementation of SqueezeExcitation.forward.

    x : (B, C, H, W)
    w1: (hidden, C)  -- torch.nn.Linear(dim, hidden, bias=False).weight
    w2: (C, hidden)  -- torch.nn.Linear(hidden, dim, bias=False).weight
    """
    B, C, H, W = x.shape
    hidden = w1.shape[0]
    HW = H * W
    inv_hw = 1.0 / float(HW)

    xf = x.reshape(B, C, HW)                       # zero-copy; lane axis = H*W
    w1_t = jnp.asarray(w1, jnp.float32).T          # (C, hidden)
    w2_t = jnp.asarray(w2, jnp.float32).T          # (hidden, C)

    itemsize = jnp.dtype(x.dtype).itemsize
    sample_bytes = C * HW * itemsize

    vmem_cap = _vmem_capacity_bytes()
    budget = (vmem_cap * 3) // 5                   # headroom for weights / temps / compiler scratch
    if block_bytes is None:
        block_bytes = min(8 * 1024 * 1024, budget // 4)   # 4x block = double-buffered in+out
    block_bytes = max(int(block_bytes), 1)

    fused = (not force_two_pass) and (4 * sample_bytes <= budget)

    if fused:
        # ---------------- fused single-pass path ----------------
        block_b = max(1, block_bytes // sample_bytes)
        if B >= 4:
            block_b = min(block_b, B // 4)         # keep >= 4 grid steps: pipelining + megacore
        block_b = max(1, min(block_b, B))
        grid_b = pl.cdiv(B, block_b)               # ragged tail handled by masked OOB block
        block_in_bytes = block_b * sample_bytes
        vmem_limit = min(int(vmem_cap * 0.9),
                         max(32 * 1024 * 1024, 6 * block_in_bytes + 8 * 1024 * 1024))

        cost = pl.CostEstimate(
            flops=int(2 * B * C * HW + 4 * B * C * hidden),
            transcendentals=int(B * (C + 2 * hidden)),
            bytes_accessed=int(2 * B * C * HW * itemsize + 2 * C * hidden * 4),
        )

        out = pl.pallas_call(
            functools.partial(_se_fused_kernel, inv_hw=inv_hw),
            out_shape=jax.ShapeDtypeStruct((B, C, HW), x.dtype),
            grid_spec=pltpu.PrefetchScalarGridSpec(
                num_scalar_prefetch=0,
                grid=(grid_b,),
                in_specs=[
                    pl.BlockSpec((block_b, C, HW), lambda i: (i, 0, 0)),
                    pl.BlockSpec((C, hidden), lambda i: (0, 0)),
                    pl.BlockSpec((hidden, C), lambda i: (0, 0)),
                ],
                out_specs=pl.BlockSpec((block_b, C, HW), lambda i: (i, 0, 0)),
            ),
            compiler_params=pltpu.CompilerParams(
                dimension_semantics=("parallel",),
                vmem_limit_bytes=int(vmem_limit),
            ),
            cost_estimate=cost,
        )(xf, w1_t, w2_t)
        return out.reshape(B, C, H, W)

    # ---------------- two-pass fallback (HW-tiled) ----------------
    lane_bytes = max(C * itemsize, 1)                      # bytes per spatial position
    hw_tile = _round_down_multiple(max(block_bytes // lane_bytes, 128), 128)
    if hw_tile >= HW:
        hw_tile = HW
    n_hw = pl.cdiv(HW, hw_tile)
    block_in_bytes = C * hw_tile * itemsize
    vmem_limit = min(int(vmem_cap * 0.9),
                     max(32 * 1024 * 1024, 6 * block_in_bytes + 8 * 1024 * 1024))

    gate = pl.pallas_call(
        functools.partial(_se_pool_gate_kernel, inv_hw=inv_hw, hw_valid=HW),
        out_shape=jax.ShapeDtypeStruct((B, C, 1), jnp.float32),
        grid_spec=pltpu.PrefetchScalarGridSpec(
            num_scalar_prefetch=0,
            grid=(B, n_hw),
            in_specs=[
                pl.BlockSpec((1, C, hw_tile), lambda b, k: (b, 0, k)),
                pl.BlockSpec((C, hidden), lambda b, k: (0, 0)),
                pl.BlockSpec((hidden, C), lambda b, k: (0, 0)),
            ],
            out_specs=pl.BlockSpec((1, C, 1), lambda b, k: (b, 0, 0)),
            scratch_shapes=[pltpu.VMEM((1, C), jnp.float32)],
        ),
        compiler_params=pltpu.CompilerParams(
            dimension_semantics=("parallel", "arbitrary"),
            vmem_limit_bytes=int(vmem_limit),
        ),
    )(xf, w1_t, w2_t)

    out = pl.pallas_call(
        _se_scale_kernel,
        out_shape=jax.ShapeDtypeStruct((B, C, HW), x.dtype),
        grid_spec=pltpu.PrefetchScalarGridSpec(
            num_scalar_prefetch=0,
            grid=(B, n_hw),
            in_specs=[
                pl.BlockSpec((1, C, hw_tile), lambda b, k: (b, 0, k)),
                pl.BlockSpec((1, C, 1), lambda b, k: (b, 0, 0)),
            ],
            out_specs=pl.BlockSpec((1, C, hw_tile), lambda b, k: (b, 0, k)),
        ),
        compiler_params=pltpu.CompilerParams(
            dimension_semantics=("parallel", "parallel"),
            vmem_limit_bytes=int(vmem_limit),
        ),
    )(xf, gate)
    return out.reshape(B, C, H, W)


if __name__ == "__main__":
    key = jax.random.PRNGKey(0)
    kx, k1, k2 = jax.random.split(key, 3)

    B, C, H, W = 2, 32, 16, 16
    shrinkage_rate = 0.25
    hidden = int(C * shrinkage_rate)               # 8

    x = jax.random.normal(kx, (B, C, H, W), dtype=jnp.float32)
    w1 = jax.random.normal(k1, (hidden, C), dtype=jnp.float32) * 0.1   # Linear(C, hidden).weight
    w2 = jax.random.normal(k2, (C, hidden), dtype=jnp.float32) * 0.1   # Linear(hidden, C).weight

    # Pure-JAX reference of the PyTorch forward.
    pooled = x.mean(axis=(2, 3))                                       # (B, C)
    h = pooled @ w1.T
    h = h * jax.nn.sigmoid(h)                                          # SiLU
    gate = jax.nn.sigmoid(h @ w2.T)                                    # (B, C)
    ref = x * gate[:, :, None, None]

    # Fused path.
    y = jax.block_until_ready(squeeze_excitation(x, w1, w2))
    assert y.shape == x.shape and y.dtype == x.dtype
    assert jnp.allclose(y, ref, rtol=1e-5, atol=1e-5), (
        f"fused max abs err = {float(jnp.max(jnp.abs(y - ref)))}")

    # Two-pass fallback path, forced with a tiny block budget so the HW reduction
    # axis actually has several steps (exercises the accumulator + finalize logic).
    y2 = jax.block_until_ready(
        squeeze_excitation(x, w1, w2, block_bytes=16 * 1024, force_two_pass=True))
    assert jnp.allclose(y2, ref, rtol=1e-5, atol=1e-5), (
        f"two-pass max abs err = {float(jnp.max(jnp.abs(y2 - ref)))}")

    print("KERNEL_OK")
</pallas_src>

<mosaic_0001>
module attributes {stable_mosaic.version = 11 : i64} {
  func.func @_se_fused_kernel(%arg0: i32, %arg1: memref<2x32x256xf32, #tpu.memory_space<vmem>>, %arg2: memref<32x8xf32, #tpu.memory_space<vmem>>, %arg3: memref<8x32xf32, #tpu.memory_space<vmem>>, %arg4: memref<2x32x256xf32, #tpu.memory_space<vmem>>) attributes {dimension_semantics = [#tpu.dimension_semantics<parallel>], iteration_bounds = array<i64: 1>, scalar_prefetch = 0 : i64, scratch_operands = 0 : i64, tpu.core_type = #tpu.core_type<tc>, window_params = [{transform_indices = @transform_0, window_bounds = array<i64: 2, 32, 256>}, {pipeline_mode = #tpu.pipeline_mode<synchronous>, transform_indices = @transform_1, window_bounds = array<i64: 32, 8>}, {pipeline_mode = #tpu.pipeline_mode<synchronous>, transform_indices = @transform_2, window_bounds = array<i64: 8, 32>}, {transform_indices = @transform_3, window_bounds = array<i64: 2, 32, 256>}]} {
    %c0 = arith.constant 0 : index
    %c0_0 = arith.constant 0 : index
    %c0_1 = arith.constant 0 : index
    %0 = vector.load %arg1[%c0, %c0_0, %c0_1] : memref<2x32x256xf32, #tpu.memory_space<vmem>>, vector<2x32x256xf32>
    %cst = arith.constant dense<0.000000e+00> : vector<2x32xf32>
    %1 = vector.multi_reduction <add>, %0, %cst [2] : vector<2x32x256xf32> to vector<2x32xf32>
    %cst_2 = arith.constant 3.906250e-03 : f32
    %2 = vector.broadcast %cst_2 : f32 to vector<2x32xf32>
    %3 = arith.mulf %1, %2 : vector<2x32xf32>
    %c0_3 = arith.constant 0 : index
    %c0_4 = arith.constant 0 : index
    %4 = vector.load %arg2[%c0_3, %c0_4] : memref<32x8xf32, #tpu.memory_space<vmem>>, vector<32x8xf32>
    %cst_5 = arith.constant dense<0.000000e+00> : vector<2x8xf32>
    %5 = tpu.matmul %3, %4, %cst_5 {dimension_numbers = #tpu.dot_dimension_numbers<[1], [0], [0], [1], [0, 0, 1, 1], [], []>} : vector<2x32xf32>, vector<32x8xf32>, vector<2x8xf32> -> vector<2x8xf32>
    %6 = arith.negf %5 : vector<2x8xf32>
    %7 = math.exp %6 : vector<2x8xf32>
    %cst_6 = arith.constant 1.000000e+00 : f32
    %8 = vector.broadcast %cst_6 : f32 to vector<2x8xf32>
    %9 = arith.addf %8, %7 : vector<2x8xf32>
    %10 = arith.divf %8, %9 : vector<2x8xf32>
    %11 = arith.mulf %5, %10 : vector<2x8xf32>
    %c0_7 = arith.constant 0 : index
    %c0_8 = arith.constant 0 : index
    %12 = vector.load %arg3[%c0_7, %c0_8] : memref<8x32xf32, #tpu.memory_space<vmem>>, vector<8x32xf32>
    %cst_9 = arith.constant dense<0.000000e+00> : vector<2x32xf32>
    %13 = tpu.matmul %11, %12, %cst_9 {dimension_numbers = #tpu.dot_dimension_numbers<[1], [0], [0], [1], [0, 0, 1, 1], [], []>} : vector<2x8xf32>, vector<8x32xf32>, vector<2x32xf32> -> vector<2x32xf32>
    %14 = arith.negf %13 : vector<2x32xf32>
    %15 = math.exp %14 : vector<2x32xf32>
    %cst_10 = arith.constant 1.000000e+00 : f32
    %16 = vector.broadcast %cst_10 : f32 to vector<2x32xf32>
    %17 = arith.addf %16, %15 : vector<2x32xf32>
    %18 = arith.divf %16, %17 : vector<2x32xf32>
    %c0_11 = arith.constant 0 : index
    %c0_12 = arith.constant 0 : index
    %c0_13 = arith.constant 0 : index
    %19 = vector.load %arg1[%c0_11, %c0_12, %c0_13] : memref<2x32x256xf32, #tpu.memory_space<vmem>>, vector<2x32x256xf32>
    %20 = vector.shape_cast %18 : vector<2x32xf32> to vector<2x32x1xf32>
    %21 = vector.broadcast %20 : vector<2x32x1xf32> to vector<2x32x256xf32>
    %22 = arith.mulf %19, %21 : vector<2x32x256xf32>
    %c0_14 = arith.constant 0 : index
    %c0_15 = arith.constant 0 : index
    %c0_16 = arith.constant 0 : index
    %23 = vector.load %arg4[%c0_14, %c0_15, %c0_16] : memref<2x32x256xf32, #tpu.memory_space<vmem>>, vector<2x32x256xf32>
    tpu.vector_store %arg4[%c0_14, %c0_15, %c0_16], %22 {strides = array<i32>} : memref<2x32x256xf32, #tpu.memory_space<vmem>>, vector<2x32x256xf32>,
    return
  }
  func.func @transform_0(%arg0: i32) -> (i32, i32, i32) {
    %c0_i32 = arith.constant 0 : i32
    %c0_i32_0 = arith.constant 0 : i32
    %c0_i32_1 = arith.constant 0 : i32
    return %arg0, %c0_i32, %c0_i32_0 : i32, i32, i32
  }
  func.func @transform_1(%arg0: i32) -> (i32, i32) {
    %c0_i32 = arith.constant 0 : i32
    %c0_i32_0 = arith.constant 0 : i32
    %c0_i32_1 = arith.constant 0 : i32
    return %c0_i32, %c0_i32_0 : i32, i32
  }
  func.func @transform_2(%arg0: i32) -> (i32, i32) {
    %c0_i32 = arith.constant 0 : i32
    %c0_i32_0 = arith.constant 0 : i32
    %c0_i32_1 = arith.constant 0 : i32
    return %c0_i32, %c0_i32_0 : i32, i32
  }
  func.func @transform_3(%arg0: i32) -> (i32, i32, i32) {
    %c0_i32 = arith.constant 0 : i32
    %c0_i32_0 = arith.constant 0 : i32
    %c0_i32_1 = arith.constant 0 : i32
    return %arg0, %c0_i32, %c0_i32_0 : i32, i32, i32
  }
}

</mosaic_0001>

<bundles_post_ra>
// kernel: tpu_custom_call.1
= control target key start
LH: loop header
LB: loop body
LE: loop exit
PB: predicated region body
PF: predicated region fallthrough
CT: control target
= control target key end

     0   :  { %8 = vsyncpa [#allocation3], 0  ;;  %s595_s0 = inlined_call_operand.hbm [shape: f32[2,32,256], index: 0, kind: input, shape index: {}]   ;;  %s596_s1 = inlined_call_operand.vmem [shape: f32[32,8], index: 1, kind: input, shape index: {}]   ;;  %s597_s2 = inlined_call_operand.vmem [shape: f32[8,32], index: 2, kind: input, shape index: {}]   ;;  %s598_s3 = inlined_call_operand.hbm [shape: f32[2,32,256], index: 3, kind: output, shape index: {}]  }
   0x1   :  { %9 = vsyncpa [#allocation4], 0  ;;  %s470_s12 = smov [#allocation2]  }
   0x2   :  { %s15_s13 = sshll.u32 %s470_s12, 4  ;;  %s16_s13 = int_to_ptr.vmem [resolvable:$true] %s15_s13 }
   0x3   :  { %s434_s14 = scalar_lea.vmem %s16_s13, 2048  ;;  %p439_p1 = scmp.lt.s32.totalorder %s16_s13, %s16_s13 }
   0x4   :  { %p435_p0 = scmp.ne.s32.totalorder %s16_s13, %s434_s14  ;;  %p440_p2 = scmp.lt.s32.totalorder %s434_s14, %s434_s14 }
   0x6   :  { %p441_p3 = por %p440_p2, %p439_p1 }
   0x8   :  { %p442_p4 = pnand %p441_p3, %p435_p0 }
   0xa   :  { %445 = shalt.err (!%p442_p4)
}
   0xb   :  { %s471_s15 = smov 256   ;;  %s472_s16 = smov 16  }
   0xc   :  { %21 = dma.hbm_to_vmem [thread:$0]  %s595_s0, 2048, %s16_s13, [#allocation3], %s471_s15, %s471_s15, %s472_s16  }
   0xd   :  { %466 = dma.done.wait [#allocation3], 2048  }
   0xe   :  { %467 = vsyncadd [#allocation3], 4294965248  ;;  %v502_v0 = vld [vmem:[#allocation2 + $0x40] sm:$0xff]  ;;  %v504_v1 = vld [vmem:[#allocation2 + $0x48] sm:$0xff]  ;;  %v473_v24 = vmov 0.0   ;;  %vm474_vm0 = vmmov 0   ;;  %v89_v29 = vlaneseq }
   0xf   :  { %v506_v2 = vld [vmem:[#allocation2] sm:$0xff]  ;;  %v57_v3 = vadd.f32 %v504_v1, %v502_v0  ;;  %v510_v4 = vld [vmem:[#allocation2 + $0x8] sm:$0xff]  ;;  %v512_v5 = vld [vmem:[#allocation2 + $0x50] sm:$0xff]  ;;  %396 = vmatprep.subr.mxu0 %v473_v24  ;;  %407 = vmatprep.subr.mxu1 %v473_v24  ;;  %vm100_vm1 = vcmask 130112   ;;  %vm107_vm2 = vcmask 195712   ;;  %vm114_vm3 = vcmask 261312  }
  0x10   :  { %v514_v6 = vld [vmem:[#allocation2 + $0x58] sm:$0xff]  ;;  %v45_v7 = vadd.f32 %v510_v4, %v506_v2  ;;  %v518_v8 = vld [vmem:[#allocation2 + $0x10] sm:$0xff]  ;;  %v526_v12 = vld [vmem:[#allocation2 + $0x60] sm:$0xff]  ;;  %404 = vmatprep.mubr.msk.f32.mxu0 %vm474_vm0, %v473_v24  ;;  %409 = vmatprep.mubr.msk.f32.mxu1 %vm474_vm0, %v473_v24  ;;  %v90_v31 = vand.u32 127, %v89_v29  ;;  %v562_v36 = vshrl.u32 %v89_v29, 7  ;;  %vm135_vm4 = vcmask 1041409  }
  0x11   :  { %v520_v9 = vld [vmem:[#allocation2 + $0x18] sm:$0xff]  ;;  %58 = vadd.xlane.f32.xlu1 %v57_v3  ;;  %v60_v10 = vadd.f32 %v514_v6, %v512_v5  ;;  %v528_v13 = vld [vmem:[#allocation2 + $0x68] sm:$0xff]  ;;  %v530_v14 = vld [vmem:[#allocation2 + $0x20] sm:$0xff]  ;;  %vm137_vm5 = vcmask 261120   ;;  %vm218_vm6 = vcmask 64512  }
  0x12   :  { %46 = vadd.xlane.f32.xlu0 %v45_v7  ;;  %v48_v11 = vadd.f32 %v520_v9, %v518_v8  ;;  %v532_v15 = vld [vmem:[#allocation2 + $0x28] sm:$0xff]  ;;  %v63_v16 = vadd.f32 %v528_v13, %v526_v12  ;;  %v538_v18 = vld [vmem:[#allocation2 + $0x70] sm:$0xff]  ;;  %v540_v19 = vld [vmem:[#allocation2 + $0x78] sm:$0xff]  ;;  %v95_v33 = vadd.s32 4294967288, %v90_v31  ;;  %v102_v35 = vadd.s32 4294967280, %v90_v31 }
  0x13   :  { %v51_v17 = vadd.f32 %v532_v15, %v530_v14  ;;  %v542_v20 = vld [vmem:[#allocation2 + $0x30] sm:$0xff]  ;;  %v544_v21 = vld [vmem:[#allocation2 + $0x38] sm:$0xff]  ;;  %v66_v22 = vadd.f32 %v540_v19, %v538_v18  ;;  %v78_v27 = vld [vmem:[%s596_s1 + $0x8] sm:$0xff]  ;;  %v109_v40 = vadd.s32 4294967272, %v90_v31  ;;  %v93_v44 = vsub.s32 %v90_v31, %v562_v36 }
  0x14   :  { %v54_v23 = vadd.f32 %v544_v21, %v542_v20  ;;  %v80_v25 = vld [vmem:[%s596_s1 + $0x18] sm:$0xff]  ;;  %v79_v26 = vld [vmem:[%s596_s1 + $0x10] sm:$0xff]  ;;  %v77_v28 = vld [vmem:[%s596_s1] sm:$0xff]  ;;  %v98_v38 = vsub.s32 %v95_v33, %v562_v36  ;;  %v105_v42 = vsub.s32 %v102_v35, %v562_v36  ;;  %v300_v35 = vsub.s32 0, %v562_v36 }
  0x15   :  { %61 = vadd.xlane.f32.xlu1 %v60_v10  ;;  %397 = vmatpush3.msra.mxu0 %v80_v25  ;;  %v112_v51 = vsub.s32 %v109_v40, %v562_v36 }
  0x16   :  { %49 = vadd.xlane.f32.xlu0 %v48_v11  ;;  %398 = vmatprep.subr.mxu0 %v473_v24 }
  0x17   :  { %399 = vmatpush3.msra.mxu0 %v79_v26 }
  0x18   :  { %400 = vmatprep.subr.mxu0 %v473_v24 }
  0x19   :  { %64 = vadd.xlane.f32.xlu1 %v63_v16  ;;  %401 = vmatpush3.msra.mxu0 %v78_v27 }
  0x1a   :  { %52 = vadd.xlane.f32.xlu0 %v51_v17  ;;  %402 = vmatprep.subr.mxu0 %v473_v24 }
  0x1b   :  { %403 = vmatpush3.msra.mxu0 %v77_v28 }
  0x1d   :  { %67 = vadd.xlane.f32.xlu1 %v66_v22  ;;  %v217_v22 = vld [vmem:[%s597_s2] sm:$0xff]  ;;  %s475_s2 = smov [#allocation5]  }
  0x1e   :  { %55 = vadd.xlane.f32.xlu0 %v54_v23  ;;  %408 = vmatpush3.msra.mxu1 %v217_v22  ;;  %s373_s27 = sshll.u32 %s475_s2, 4  ;;  %s374_s27 = int_to_ptr.vmem [resolvable:$true] %s373_s27 }
  0x1f   :  { %s446_s28 = scalar_lea.vmem %s374_s27, 2048  ;;  %p451_p6 = scmp.lt.s32.totalorder %s374_s27, %s374_s27 }
  0x20   :  { %p447_p5 = scmp.ne.s32.totalorder %s374_s27, %s446_s28  ;;  %p452_p7 = scmp.lt.s32.totalorder %s446_s28, %s446_s28 }
  0x22   :  { %p453_p8 = por %p452_p7, %p451_p6 }
  0x24   :  { %p454_p9 = pnand %p453_p8, %p447_p5 }
  0x9a   :  { %v59_v30 = vpop.xlane.xlu1 %58 }
  0x9b   :  { %v47_v32 = vpop.xlane.xlu0 %46  ;;  %v73_v45 = vmul.f32 0.00390625, %v59_v30 }
  0x9c   :  { %v69_v48 = vmul.f32 0.00390625, %v47_v32 }
  0x9d   :  { %v119_v55 = vrot.slane %v73_v45, %v93_v44 }
  0x9e   :  { %v62_v34 = vpop.xlane.xlu1 %61  ;;  %v94_v59 = vrot.slane %v69_v48, %v93_v44 }
  0x9f   :  { %v50_v37 = vpop.xlane.xlu0 %49  ;;  %v74_v39 = vmul.f32 0.00390625, %v62_v34 }
  0xa0   :  { %v70_v41 = vmul.f32 0.00390625, %v50_v37 }
  0xa1   :  { %v123_v50 = vrot.slane %v74_v39, %v98_v38  ;;  %v319_v39 = vsub.s32 1, %v562_v36 }
  0xa2   :  { %v65_v43 = vpop.xlane.xlu1 %64  ;;  %v99_v52 = vrot.slane %v70_v41, %v98_v38 }
  0xa3   :  { %v75_v46 = vmul.f32 0.00390625, %v65_v43  ;;  %v53_v47 = vpop.xlane.xlu0 %52  ;;  %v124_v61 = vsel %vm100_vm1, %v123_v50, %v119_v55 }
  0xa4   :  { %v71_v49 = vmul.f32 0.00390625, %v53_v47  ;;  %v101_v63 = vsel %vm100_vm1, %v99_v52, %v94_v59 }
  0xa5   :  { %v128_v53 = vrot.slane %v75_v46, %v105_v42 }
  0xa6   :  { %v68_v54 = vpop.xlane.xlu1 %67  ;;  %v106_v56 = vrot.slane %v71_v49, %v105_v42 }
  0xa7   :  { %v76_v57 = vmul.f32 0.00390625, %v68_v54  ;;  %v56_v58 = vpop.xlane.xlu0 %55  ;;  %v129_v3 = vsel %vm107_vm2, %v128_v53, %v124_v61 }
  0xa8   :  { %v72_v60 = vmul.f32 0.00390625, %v56_v58  ;;  %v108_v10 = vsel %vm107_vm2, %v106_v56, %v101_v63 }
  0xa9   :  { %v133_v62 = vrot.slane %v76_v57, %v112_v51 }
  0xaa   :  { %v113_v7 = vrot.slane %v72_v60, %v112_v51 }
  0xab   :  { %v134_v11 = vsel %vm114_vm3, %v133_v62, %v129_v3 }
  0xac   :  { %v115_v16 = vsel %vm114_vm3, %v113_v7, %v108_v10 }
  0xad   :  { %v136_v17 = vsel %vm135_vm4, %v134_v11, %v115_v16 }
  0xae   :  { %405 = vmatmul.mubr.msk.f32.vlgmr.msra.gmra.mxu0 %vm137_vm5, %v136_v17 }
 0x16e   :  { %v206_v23 = vpop.f32.mrf.mxu0 }
 0x16f   :  { %v386_v24 = vmul.f32 -1.442695, %v206_v23 }
 0x170   :  { %v406_v25 = vpop.f32.mrf.mxu0 }
 0x171   :  { %418 = vpow2.f32 %v386_v24 }
 0x17e   :  { %v419_v26 = vpop.eup %418 }
 0x17f   :  { %v213_v27 = vadd.f32 1.0, %v419_v26 }
 0x181   :  { %420 = vrcp.f32 %v213_v27 }
 0x18e   :  { %v421_v28 = vpop.eup %420 }
 0x18f   :  { %v216_v29 = vmul.f32 %v421_v28, %v206_v23 }
 0x191   :  { %410 = vmatmul.mubr.msk.f32.vlgmr.msra.gmra.mxu1 %vm218_vm6, %v216_v29 }
 0x251   :  { %v288_v30 = vpop.f32.mrf.mxu1 }
 0x252   :  { %v388_v31 = vmul.f32 -1.442695, %v288_v30 }
 0x253   :  { %v411_v32 = vpop.f32.mrf.mxu1 }
 0x254   :  { %422 = vpow2.f32 %v388_v31 }
 0x261   :  { %v423_v33 = vpop.eup %422 }
 0x262   :  { %v295_v34 = vadd.f32 1.0, %v423_v33 }
 0x264   :  { %424 = vrcp.f32 %v295_v34 }
 0x271   :  { %v425_v37 = vpop.eup %424 }
 0x272   :  { %v301_v38 = vrot.slane %v425_v37, %v300_v35  ;;  %v320_v40 = vrot.slane %v425_v37, %v319_v39 }
 0x274   :  { %307 = vbcast.lane.b32.xlu1 %v301_v38, 264  ;;  %303 = vbcast.lane.b32.xlu0 %v301_v38, 256 }
 0x278   :  { %311 = vbcast.lane.b32.xlu1 %v301_v38, 272  ;;  %322 = vbcast.lane.b32.xlu0 %v320_v40, 256 }
 0x27c   :  { %315 = vbcast.lane.b32.xlu1 %v301_v38, 280  ;;  %330 = vbcast.lane.b32.xlu0 %v320_v40, 272 }
 0x280   :  { %326 = vbcast.lane.b32.xlu1 %v320_v40, 264 }
 0x284   :  { %334 = vbcast.lane.b32.xlu1 %v320_v40, 280 }
 0x2e6   :  { %v308_v41 = vpop.permute.xlu1 %307  ;;  %v304_v42 = vpop.permute.xlu0 %303 }
 0x2e7   :  { %v338_v43 = vmul.f32 %v308_v41, %v518_v8  ;;  %v339_v44 = vmul.f32 %v308_v41, %v520_v9  ;;  %v336_v45 = vmul.f32 %v304_v42, %v506_v2  ;;  %v337_v46 = vmul.f32 %v304_v42, %v510_v4 }
 0x2e9   :  { %354 = vst [vmem:[#allocation5 + $0x10] sm:$0xff] %v338_v43  ;;  %355 = vst [vmem:[#allocation5 + $0x18] sm:$0xff] %v339_v44 }
 0x2ea   :  { %352 = vst [vmem:[#allocation5] sm:$0xff] %v336_v45  ;;  %353 = vst [vmem:[#allocation5 + $0x8] sm:$0xff] %v337_v46  ;;  %v312_v36 = vpop.permute.xlu1 %311  ;;  %v323_v47 = vpop.permute.xlu0 %322 }
 0x2eb   :  { %v340_v48 = vmul.f32 %v312_v36, %v530_v14  ;;  %v341_v49 = vmul.f32 %v312_v36, %v532_v15  ;;  %v344_v50 = vmul.f32 %v323_v47, %v502_v0  ;;  %v345_v8 = vmul.f32 %v323_v47, %v504_v1 }
 0x2ed   :  { %356 = vst [vmem:[#allocation5 + $0x20] sm:$0xff] %v340_v48  ;;  %357 = vst [vmem:[#allocation5 + $0x28] sm:$0xff] %v341_v49 }
 0x2ee   :  { %360 = vst [vmem:[#allocation5 + $0x40] sm:$0xff] %v344_v50  ;;  %361 = vst [vmem:[#allocation5 + $0x48] sm:$0xff] %v345_v8  ;;  %v316_v2 = vpop.permute.xlu1 %315  ;;  %v331_v4 = vpop.permute.xlu0 %330 }
 0x2ef   :  { %v342_v9 = vmul.f32 %v316_v2, %v542_v20  ;;  %v343_v51 = vmul.f32 %v316_v2, %v544_v21  ;;  %v348_v52 = vmul.f32 %v331_v4, %v526_v12  ;;  %v349_v14 = vmul.f32 %v331_v4, %v528_v13 }
 0x2f1   :  { %358 = vst [vmem:[#allocation5 + $0x30] sm:$0xff] %v342_v9  ;;  %359 = vst [vmem:[#allocation5 + $0x38] sm:$0xff] %v343_v51 }
 0x2f2   :  { %364 = vst [vmem:[#allocation5 + $0x60] sm:$0xff] %v348_v52  ;;  %365 = vst [vmem:[#allocation5 + $0x68] sm:$0xff] %v349_v14  ;;  %v327_v0 = vpop.permute.xlu1 %326 }
 0x2f3   :  { %v346_v1 = vmul.f32 %v327_v0, %v512_v5  ;;  %v347_v15 = vmul.f32 %v327_v0, %v514_v6 }
 0x2f5   :  { %362 = vst [vmem:[#allocation5 + $0x50] sm:$0xff] %v346_v1  ;;  %363 = vst [vmem:[#allocation5 + $0x58] sm:$0xff] %v347_v15 }
 0x2f6   :  { %v335_v20 = vpop.permute.xlu1 %334 }
 0x2f7   :  { %v350_v21 = vmul.f32 %v335_v20, %v538_v18  ;;  %v351_v12 = vmul.f32 %v335_v20, %v540_v19 }
 0x2f9   :  { %366 = vst [vmem:[#allocation5 + $0x70] sm:$0xff] %v350_v21  ;;  %367 = vst [vmem:[#allocation5 + $0x78] sm:$0xff] %v351_v12 }
 0x2fa   :  { %457 = shalt.err (!%p454_p9)
}
 0x2fb   :  { %379 = dma.vmem_to_hbm [thread:$0]  %s374_s27, 2048, %s598_s3, [#allocation4], %s471_s15, %s471_s15, %s472_s16  }
 0x2fc   :  { %468 = dma.done.wait [#allocation4], 2048  }
 0x2fd   :  { %469 = vsyncadd [#allocation4], 4294965248 }
 0x2fe   :  { %383 = vsyncpa [#allocation3], 1 }
 0x2ff   :  { %384 = vsyncpa [#allocation4], 1 }

</bundles_post_ra>
